<compile_context>
chip_gen: v7x
topology: tpu7x:2x2x1
jax: 0.10.0
libtpu: 0.0.40
codegen_flags: <defaults>
</compile_context>

<pallas_src>
import functools

import jax
import jax.numpy as jnp
from jax.experimental import pallas as pl
from jax.experimental.pallas import tpu as pltpu


def _vmem_capacity_bytes():
    """Physical VMEM per core; conservative 64 MiB fallback if the query fails."""
    try:
        info = pltpu.get_tpu_info()
        cap = int(getattr(info, "vmem_capacity_bytes", 0) or 0)
        if cap > 0:
            return cap
    except Exception:
        pass
    return 64 * 1024 * 1024


# ---------------------------------------------------------------------------
# Fused single-pass kernel: squeeze -> excitation MLP -> scale for one batch.
# ---------------------------------------------------------------------------
def _se_fused_kernel(x_ref, w1_ref, b1_ref, w2t_ref, b2_ref, o_ref, *, inv_s):
    # x_ref/o_ref: (1, C, S); w1: (C, Cr) f32; b1: (1, Cr) f32;
    # w2t: (C, Cr) f32 (fc2 weight pre-transposed); b2: (C, 1) f32.
    x = x_ref[0]                                                      # (C, S)
    # Squeeze: f32-accumulated channel means, kept in column (sublane) form.
    m = jnp.sum(x, axis=1, keepdims=True, dtype=jnp.float32) * inv_s  # (C, 1)
    # Excitation MLP in broadcast form (no reshapes/transposes in-kernel).
    h = jnp.sum(m * w1_ref[...], axis=0, keepdims=True) + b1_ref[...]   # (1, Cr)
    h = jnp.maximum(h, 0.0)
    g = jnp.sum(h * w2t_ref[...], axis=1, keepdims=True) + b2_ref[...]  # (C, 1)
    g = jax.nn.sigmoid(g)
    # Scale in f32 (matches the reference math), cast once on the way out.
    o_ref[0] = (x.astype(jnp.float32) * g).astype(o_ref.dtype)


# ---------------------------------------------------------------------------
# Two-pass path kernels.
# ---------------------------------------------------------------------------
def _se_sum_kernel(x_ref, sums_ref, acc_ref, *, true_s):
    # x_ref: (R, TS) native dtype; sums_ref: (R, 1) f32; acc_ref: (R, 128) f32.
    # Grid = (row_blocks, s_tiles); S MUST stay the innermost 'arbitrary' axis
    # for the init/finalize accumulator pattern below to be valid.
    s_idx = pl.program_id(1)

    @pl.when(s_idx == 0)
    def _init():
        acc_ref[...] = jnp.zeros_like(acc_ref)

    rows, ts = x_ref.shape
    if ts % 128 == 0:
        # Lane-preserving accumulation: one VPU add per 128-lane chunk; the
        # cross-lane reduce is deferred to the once-per-row-block finalize.
        ragged = (true_s % ts) != 0
        base = s_idx * ts
        lane = (jax.lax.broadcasted_iota(jnp.int32, (rows, 128), 1)
                if ragged else None)

        def body(j, acc):
            off = pl.multiple_of(j * 128, 128)
            chunk = x_ref[:, pl.ds(off, 128)].astype(jnp.float32)
            if ragged:
                # Mask the out-of-bounds tail of the last (partial) tile: its
                # VMEM contents are undefined (no jnp.pad round-trip is used).
                chunk = jnp.where(base + off + lane < true_s, chunk, 0.0)
            return acc + chunk

        acc_ref[...] = jax.lax.fori_loop(0, ts // 128, body, acc_ref[...],
                                         unroll=4)
    else:
        # Single whole-S tile (ts == true_s): nothing out of bounds to mask.
        acc_ref[:, 0:1] += jnp.sum(x_ref[...], axis=1, keepdims=True,
                                   dtype=jnp.float32)

    @pl.when(s_idx == pl.num_programs(1) - 1)
    def _finalize():
        sums_ref[...] = jnp.sum(acc_ref[...], axis=1, keepdims=True)


def _se_scale_kernel(x_ref, gate_ref, o_ref):
    # x_ref/o_ref: (R, TS); gate_ref: (R, 1) f32.  Multiply in f32, cast once.
    o_ref[...] = (x_ref[...].astype(jnp.float32)
                  * gate_ref[...]).astype(o_ref.dtype)


# ---------------------------------------------------------------------------
# Wrapper.
# ---------------------------------------------------------------------------
def _choose_spatial_tile(S, rows, itemsize, target_bytes):
    """Lane-dense spatial tile: a multiple of 128, or the whole S."""
    max_lanes = max(128, (target_bytes // (rows * itemsize)) // 128 * 128)
    if S <= max_lanes:
        return S
    ts = max_lanes
    if S % 128 == 0:
        # Prefer a tile that divides S exactly (no ragged tail), but don't
        # shrink the tile by more than 2x to get it.
        t = ts
        while t >= 128 and S % t != 0:
            t -= 128
        if t >= max(128, ts // 2):
            ts = t
    return ts


def channel_se_layer_3d(x, w1, b1, w2, b2, *,
                        fused_threshold_bytes=None,
                        target_block_bytes=None):
    """SE forward.  x: (B, C, D, H, W).  y = x @ w + b convention:
       w1: (C, Cr), b1: (Cr,), w2: (Cr, C), b2: (C,)."""
    B, C, D, H, W = x.shape
    S = D * H * W
    Cr = w1.shape[1]
    itemsize = jnp.dtype(x.dtype).itemsize
    inv_s = 1.0 / float(S)

    vmem_cap = _vmem_capacity_bytes()
    vmem_limit = min((vmem_cap * 3) // 4, 100 * 1024 * 1024)
    if fused_threshold_bytes is None:
        # Leave room for double-buffered in/out blocks + f32 temps in-kernel.
        fused_threshold_bytes = vmem_cap // 12
    if target_block_bytes is None:
        # Bigger blocks on v7x (64 MiB VMEM, ~3.2 TB/s HBM) to amortize the
        # per-grid-step overhead; ~2 MiB already sits at the knee on v5e/v6e.
        target_block_bytes = (4 * 1024 * 1024 if vmem_cap <= 64 * 1024 * 1024
                              else 2 * 1024 * 1024)

    w1f = w1.astype(jnp.float32)
    b1f = b1.astype(jnp.float32)
    w2f = w2.astype(jnp.float32)
    b2f = b2.astype(jnp.float32)

    # ---------------- fused single-pass path ----------------
    if C * S * itemsize <= fused_threshold_bytes:
        x3 = x.reshape(B, C, S)
        out = pl.pallas_call(
            functools.partial(_se_fused_kernel, inv_s=inv_s),
            out_shape=jax.ShapeDtypeStruct((B, C, S), x.dtype),
            grid_spec=pltpu.PrefetchScalarGridSpec(
                num_scalar_prefetch=0,
                grid=(B,),
                in_specs=[
                    pl.BlockSpec((1, C, S), lambda b: (b, 0, 0)),
                    pl.BlockSpec((C, Cr), lambda b: (0, 0)),
                    pl.BlockSpec((1, Cr), lambda b: (0, 0)),
                    pl.BlockSpec((C, Cr), lambda b: (0, 0)),
                    pl.BlockSpec((C, 1), lambda b: (0, 0)),
                ],
                out_specs=pl.BlockSpec((1, C, S), lambda b: (b, 0, 0)),
            ),
            compiler_params=pltpu.CompilerParams(
                dimension_semantics=("parallel",),
                vmem_limit_bytes=vmem_limit),
            cost_estimate=pl.CostEstimate(
                flops=2 * B * C * S,
                transcendentals=B * (C + Cr),
                bytes_accessed=2 * B * C * S * itemsize),
        )(x3, w1f, b1f.reshape(1, Cr), w2f.T, b2f.reshape(C, 1))
        # TODO(synk): on v7x with B == 1 the fused grid runs on one TensorCore;
        # a core-parallel split of S would use both.
        return out.reshape(B, C, D, H, W)

    # ---------------- two-pass tiled path ----------------
    rows = B * C                              # fold B,C to fill all 8 sublanes
    R = rows if rows <= 64 else 64            # 64 is a multiple of 8
    row_blocks = pl.cdiv(rows, R)
    ts = _choose_spatial_tile(S, R, itemsize, target_block_bytes)
    s_tiles = pl.cdiv(S, ts)
    assert ts % 128 == 0 or s_tiles == 1

    x2 = x.reshape(rows, S)                   # free: pure metadata reshape

    # Pass 1: per-(batch, channel) f32 sums over S (no pad / no extra traffic).
    sums = pl.pallas_call(
        functools.partial(_se_sum_kernel, true_s=S),
        out_shape=jax.ShapeDtypeStruct((rows, 1), jnp.float32),
        grid_spec=pltpu.PrefetchScalarGridSpec(
            num_scalar_prefetch=0,
            grid=(row_blocks, s_tiles),       # S innermost: accumulator axis
            in_specs=[pl.BlockSpec((R, ts), lambda r, s: (r, s))],
            out_specs=pl.BlockSpec((R, 1), lambda r, s: (r, 0)),
            scratch_shapes=[pltpu.VMEM((R, 128), jnp.float32)],
        ),
        compiler_params=pltpu.CompilerParams(
            dimension_semantics=("parallel", "arbitrary"),
            vmem_limit_bytes=vmem_limit),
        cost_estimate=pl.CostEstimate(
            flops=rows * S,
            transcendentals=0,
            bytes_accessed=rows * S * itemsize),
    )(x2)

    # Excitation MLP, batched over B, in plain XLA (B x C is tiny; keeps the
    # hot Pallas loops free of weight buffers and cold MLP branches).
    mean = sums.reshape(B, C) * inv_s
    h = jnp.maximum(mean @ w1f + b1f, 0.0)
    gate = jax.nn.sigmoid(h @ w2f + b2f)                     # (B, C) f32
    gate = gate.reshape(rows, 1)

    # Pass 2: per-channel re-scale.
    out2 = pl.pallas_call(
        _se_scale_kernel,
        out_shape=jax.ShapeDtypeStruct((rows, S), x.dtype),
        grid_spec=pltpu.PrefetchScalarGridSpec(
            num_scalar_prefetch=0,
            grid=(row_blocks, s_tiles),
            in_specs=[
                pl.BlockSpec((R, ts), lambda r, s: (r, s)),
                pl.BlockSpec((R, 1), lambda r, s: (r, 0)),
            ],
            out_specs=pl.BlockSpec((R, ts), lambda r, s: (r, s)),
        ),
        compiler_params=pltpu.CompilerParams(
            dimension_semantics=("parallel", "parallel"),
            vmem_limit_bytes=vmem_limit),
        cost_estimate=pl.CostEstimate(
            flops=rows * S,
            transcendentals=0,
            bytes_accessed=2 * rows * S * itemsize),
    )(x2, gate)

    return out2.reshape(B, C, D, H, W)


def _reference(x, w1, b1, w2, b2):
    xf = x.astype(jnp.float32)
    s = jnp.mean(xf, axis=(2, 3, 4))                                   # (B, C)
    h = jax.nn.relu(s @ w1.astype(jnp.float32) + b1.astype(jnp.float32))
    g = jax.nn.sigmoid(h @ w2.astype(jnp.float32) + b2.astype(jnp.float32))
    return (xf * g[:, :, None, None, None]).astype(x.dtype)


if __name__ == "__main__":
    key = jax.random.PRNGKey(0)
    k_x, k_w1, k_b1, k_w2, k_b2, k_x2 = jax.random.split(key, 6)

    B, C, D, H, W = 2, 4, 16, 16, 16
    reduction_ratio = 2
    Cr = C // reduction_ratio

    x = jax.random.normal(k_x, (B, C, D, H, W), dtype=jnp.float32)
    lim1 = 1.0 / (C ** 0.5)
    lim2 = 1.0 / (Cr ** 0.5)
    w1 = jax.random.uniform(k_w1, (C, Cr), jnp.float32, -lim1, lim1)
    b1 = jax.random.uniform(k_b1, (Cr,), jnp.float32, -lim1, lim1)
    w2 = jax.random.uniform(k_w2, (Cr, C), jnp.float32, -lim2, lim2)
    b2 = jax.random.uniform(k_b2, (C,), jnp.float32, -lim2, lim2)

    # 1) Fused single-pass path (per-batch slab fits VMEM).
    out = jax.block_until_ready(channel_se_layer_3d(x, w1, b1, w2, b2))
    ref = jax.block_until_ready(_reference(x, w1, b1, w2, b2))
    assert out.shape == (B, C, D, H, W)
    assert jnp.allclose(out, ref, atol=1e-5, rtol=1e-5), "fused path mismatch"

    # 2) Two-pass tiled path with a ragged spatial tail (forced small tiles).
    D2, H2, W2 = 9, 10, 11                                   # S = 990 (ragged)
    x2 = jax.random.normal(k_x2, (B, C, D2, H2, W2), dtype=jnp.float32)
    ref2 = jax.block_until_ready(_reference(x2, w1, b1, w2, b2))
    out2 = jax.block_until_ready(channel_se_layer_3d(
        x2, w1, b1, w2, b2,
        fused_threshold_bytes=0, target_block_bytes=16 * 1024))
    assert jnp.allclose(out2, ref2, atol=1e-5, rtol=1e-5), "tiled path mismatch"

    # 3) Two-pass path, single whole-S tile whose length is not a 128-multiple.
    out3 = jax.block_until_ready(channel_se_layer_3d(
        x2, w1, b1, w2, b2, fused_threshold_bytes=0))
    assert jnp.allclose(out3, ref2, atol=1e-5, rtol=1e-5), "odd-tile mismatch"

    print("KERNEL_OK")
</pallas_src>

<mosaic_0001>
module attributes {stable_mosaic.version = 11 : i64} {
  func.func @_se_fused_kernel(%arg0: i32, %arg1: memref<1x4x4096xf32, #tpu.memory_space<vmem>>, %arg2: memref<4x2xf32, #tpu.memory_space<vmem>>, %arg3: memref<1x2xf32, #tpu.memory_space<vmem>>, %arg4: memref<4x2xf32, #tpu.memory_space<vmem>>, %arg5: memref<4x1xf32, #tpu.memory_space<vmem>>, %arg6: memref<1x4x4096xf32, #tpu.memory_space<vmem>>) attributes {dimension_semantics = [#tpu.dimension_semantics<parallel>], iteration_bounds = array<i64: 2>, scalar_prefetch = 0 : i64, scratch_operands = 0 : i64, tpu.core_type = #tpu.core_type<tc>, window_params = [{transform_indices = @transform_0, window_bounds = array<i64: 1, 4, 4096>}, {pipeline_mode = #tpu.pipeline_mode<synchronous>, transform_indices = @transform_1, window_bounds = array<i64: 4, 2>}, {pipeline_mode = #tpu.pipeline_mode<synchronous>, transform_indices = @transform_2, window_bounds = array<i64: 1, 2>}, {pipeline_mode = #tpu.pipeline_mode<synchronous>, transform_indices = @transform_3, window_bounds = array<i64: 4, 2>}, {pipeline_mode = #tpu.pipeline_mode<synchronous>, transform_indices = @transform_4, window_bounds = array<i64: 4, 1>}, {transform_indices = @transform_5, window_bounds = array<i64: 1, 4, 4096>}]} {
    %c0 = arith.constant 0 : index
    %c0_0 = arith.constant 0 : index
    %c0_1 = arith.constant 0 : index
    %0 = vector.load %arg1[%c0, %c0_0, %c0_1] : memref<1x4x4096xf32, #tpu.memory_space<vmem>>, vector<1x4x4096xf32>
    %1 = vector.shape_cast %0 : vector<1x4x4096xf32> to vector<4x4096xf32>
    %cst = arith.constant dense<0.000000e+00> : vector<4xf32>
    %2 = vector.multi_reduction <add>, %1, %cst [1] : vector<4x4096xf32> to vector<4xf32>
    %3 = vector.shape_cast %2 : vector<4xf32> to vector<4x1xf32>
    %cst_2 = arith.constant 2.44140625E-4 : f32
    %4 = vector.broadcast %cst_2 : f32 to vector<4x1xf32>
    %5 = arith.mulf %3, %4 : vector<4x1xf32>
    %c0_3 = arith.constant 0 : index
    %c0_4 = arith.constant 0 : index
    %6 = vector.load %arg2[%c0_3, %c0_4] : memref<4x2xf32, #tpu.memory_space<vmem>>, vector<4x2xf32>
    %7 = vector.broadcast %5 : vector<4x1xf32> to vector<4x2xf32>
    %8 = arith.mulf %7, %6 : vector<4x2xf32>
    %cst_5 = arith.constant dense<0.000000e+00> : vector<2xf32>
    %9 = vector.multi_reduction <add>, %8, %cst_5 [0] : vector<4x2xf32> to vector<2xf32>
    %10 = vector.shape_cast %9 : vector<2xf32> to vector<1x2xf32>
    %c0_6 = arith.constant 0 : index
    %c0_7 = arith.constant 0 : index
    %11 = vector.load %arg3[%c0_6, %c0_7] : memref<1x2xf32, #tpu.memory_space<vmem>>, vector<1x2xf32>
    %12 = arith.addf %10, %11 : vector<1x2xf32>
    %cst_8 = arith.constant 0.000000e+00 : f32
    %13 = vector.broadcast %cst_8 : f32 to vector<1x2xf32>
    %14 = arith.maximumf %12, %13 : vector<1x2xf32>
    %c0_9 = arith.constant 0 : index
    %c0_10 = arith.constant 0 : index
    %15 = vector.load %arg4[%c0_9, %c0_10] : memref<4x2xf32, #tpu.memory_space<vmem>>, vector<4x2xf32>
    %16 = vector.broadcast %14 : vector<1x2xf32> to vector<4x2xf32>
    %17 = arith.mulf %16, %15 : vector<4x2xf32>
    %cst_11 = arith.constant dense<0.000000e+00> : vector<4xf32>
    %18 = vector.multi_reduction <add>, %17, %cst_11 [1] : vector<4x2xf32> to vector<4xf32>
    %19 = vector.shape_cast %18 : vector<4xf32> to vector<4x1xf32>
    %c0_12 = arith.constant 0 : index
    %c0_13 = arith.constant 0 : index
    %20 = vector.load %arg5[%c0_12, %c0_13] : memref<4x1xf32, #tpu.memory_space<vmem>>, vector<4x1xf32>
    %21 = arith.addf %19, %20 : vector<4x1xf32>
    %22 = arith.negf %21 : vector<4x1xf32>
    %23 = math.exp %22 : vector<4x1xf32>
    %cst_14 = arith.constant 1.000000e+00 : f32
    %24 = vector.broadcast %cst_14 : f32 to vector<4x1xf32>
    %25 = arith.addf %24, %23 : vector<4x1xf32>
    %26 = arith.divf %24, %25 : vector<4x1xf32>
    %27 = vector.broadcast %26 : vector<4x1xf32> to vector<4x4096xf32>
    %28 = arith.mulf %1, %27 : vector<4x4096xf32>
    %c0_15 = arith.constant 0 : index
    %c0_16 = arith.constant 0 : index
    %c0_17 = arith.constant 0 : index
    %29 = vector.load %arg6[%c0_15, %c0_16, %c0_17] : memref<1x4x4096xf32, #tpu.memory_space<vmem>>, vector<1x4x4096xf32>
    %30 = vector.shape_cast %29 : vector<1x4x4096xf32> to vector<4x4096xf32>
    %31 = vector.shape_cast %28 : vector<4x4096xf32> to vector<1x4x4096xf32>
    tpu.vector_store %arg6[%c0_15, %c0_16, %c0_17], %31 {strides = array<i32>} : memref<1x4x4096xf32, #tpu.memory_space<vmem>>, vector<1x4x4096xf32>,
    return
  }
  func.func @transform_0(%arg0: i32) -> (i32, i32, i32) {
    %c0_i32 = arith.constant 0 : i32
    %c0_i32_0 = arith.constant 0 : i32
    %c0_i32_1 = arith.constant 0 : i32
    return %arg0, %c0_i32, %c0_i32_0 : i32, i32, i32
  }
  func.func @transform_1(%arg0: i32) -> (i32, i32) {
    %c0_i32 = arith.constant 0 : i32
    %c0_i32_0 = arith.constant 0 : i32
    %c0_i32_1 = arith.constant 0 : i32
    return %c0_i32, %c0_i32_0 : i32, i32
  }
  func.func @transform_2(%arg0: i32) -> (i32, i32) {
    %c0_i32 = arith.constant 0 : i32
    %c0_i32_0 = arith.constant 0 : i32
    %c0_i32_1 = arith.constant 0 : i32
    return %c0_i32, %c0_i32_0 : i32, i32
  }
  func.func @transform_3(%arg0: i32) -> (i32, i32) {
    %c0_i32 = arith.constant 0 : i32
    %c0_i32_0 = arith.constant 0 : i32
    %c0_i32_1 = arith.constant 0 : i32
    return %c0_i32, %c0_i32_0 : i32, i32
  }
  func.func @transform_4(%arg0: i32) -> (i32, i32) {
    %c0_i32 = arith.constant 0 : i32
    %c0_i32_0 = arith.constant 0 : i32
    %c0_i32_1 = arith.constant 0 : i32
    return %c0_i32, %c0_i32_0 : i32, i32
  }
  func.func @transform_5(%arg0: i32) -> (i32, i32, i32) {
    %c0_i32 = arith.constant 0 : i32
    %c0_i32_0 = arith.constant 0 : i32
    %c0_i32_1 = arith.constant 0 : i32
    return %arg0, %c0_i32, %c0_i32_0 : i32, i32, i32
  }
}

</mosaic_0001>

<bundles_post_ra>
// kernel: tpu_custom_call.1
= control target key start
LH: loop header
LB: loop body
LE: loop exit
PB: predicated region body
PF: predicated region fallthrough
CT: control target
= control target key end

     0   :  { %10 = vsyncpa [#allocation3], 0  ;;  %s1094_s0 = inlined_call_operand.hbm [shape: f32[2,4,4096], index: 0, kind: input, shape index: {}]   ;;  %s1095_s1 = inlined_call_operand.vmem [shape: f32[4,2], index: 1, kind: input, shape index: {}]   ;;  %s1096_s2 = inlined_call_operand.vmem [shape: f32[1,2], index: 2, kind: input, shape index: {}]   ;;  %s1097_s3 = inlined_call_operand.vmem [shape: f32[4,2], index: 3, kind: input, shape index: {}]   ;;  %s1098_s4 = inlined_call_operand.vmem [shape: f32[4,1], index: 4, kind: input, shape index: {}]   ;;  %s1099_s5 = inlined_call_operand.hbm [shape: f32[2,4,4096], index: 5, kind: output, shape index: {}]  }
   0x1   :  { %12 = vsyncpa [#allocation3 + $0x1], 0 }
   0x2   :  { %13 = vsyncpa [#allocation4], 0 }
   0x3   :  { %15 = vsyncpa [#allocation4 + $0x1], 0  ;;  %s750_s18 = smov 0   ;;  %s752_s19 = smov 0  }
   0x4   :  { %s754_s20 = smov 0   ;;  %s756_s21 = smov 0  }
   0x5 LB: > { %s771_s22 = sadd.s32 4294967295, %s714_s21   ;;  %s531_s23 = sadd.s32 4294967294, %s714_s21   ;;  %s714_s21 = sphi %s756_s21, %s1114_s21   ;;  %s710_s20 = sphi %s754_s20, %s1113_s20   ;;  %s706_s19 = sphi %s752_s19, %s1112_s19   ;;  %s702_s18 = sphi %s750_s18, %s1111_s18  }
   0x6   : > { %s775_s24 = sadd.s32 1, %s714_s21   ;;  %s28_s25 = sadd.s32 1, %s710_s20 }
   0x7   : > { %s25_s26 = ssub.s32 %s714_s21, %s775_s24  ;;  %p35_p0 = scmp.ne.s32.totalorder %s710_s20, %s706_s19 }
   0x8   : > { %p26_p1 = scmp.eq.s32.totalorder %s25_s26, 0  ;;  %p36_p2 = scmp.eq.s32.totalorder %s714_s21, 0 }
   0x9   : > { %p41_p3 = scmp.ne.s32.totalorder %s706_s19, %s702_s18  ;;  %p42_p4 = scmp.eq.s32.totalorder %s771_s22, 0 }
   0xa   : > { %s787_s27 = scalar_select %p26_p1, %s710_s20, %s28_s25  }
   0xb   : > { %p789_p5 = por %p36_p2, %p35_p0  ;;  %p793_p6 = por %p42_p4, %p41_p3 }
   0xc   : > { %p149_p7 = scmp.eq.s32.totalorder %s771_s22, 1  ;;  %p155_p8 = scmp.eq.s32.totalorder %s531_s23, 1 }
   0xd   : > { %p560_p10 = scmp.lt.s32.totalorder %s714_s21, 2  ;;  %s187_s7 = sand.u32 1, %s710_s20  }
   0xe   : > { %p800_p11 = por %p149_p7, %p35_p0  ;;  %p804_p12 = por %p155_p8, %p41_p3 }
   0xf   : > { %s546_s8 = sshll.u32 %s714_s21, 11  ;;  %s534_s9 = sshll.u32 %s187_s7, 7 }
  0x10   : > { %s1103_s30 = scalar_select %p800_p11, 1, 0 }
  0x11   : > { %s1104_s6 = scalar_select %p804_p12, 1, 0 }
  0x12   : > { %s813_s12 = scalar_lea.hbm %s1094_s0, %s546_s8  ;;  %s191_s13 = scalar_lea.vmem [#allocation2], %s534_s9 }
  0x13   : > { %s199_s14 = sshll.u32 %s191_s13, 4  ;;  %p817_p13 = pnand %p560_p10, %p789_p5  ;;  %s821_s14 = int_to_ptr.vmem [resolvable:$true] %s199_s14 }
  0x14   : > { %s188_s16 = scalar_lea.sflag [#allocation3], %s187_s7  ;;  %s618_s17 = scalar_lea.hbm %s813_s12, 2048 }
  0x15   : > { %p619_p2 = scmp.ne.s32.totalorder %s813_s12, %s618_s17  ;;  %p620_p3 = pneg %p817_p13 }
  0x16   : > { %s623_s26 = scalar_lea.hbm %s1094_s0, 4096  ;;  %p624_p5 = scmp.lt.u32.totalorder %s813_s12, %s1094_s0 }
  0x17   : > { %p621_p4 = pnand %p620_p3, %p619_p2  ;;  %p625_p8 = scmp.lt.u32.totalorder %s623_s26, %s618_s17 }
  0x18   : > { %p627_p9 = scmp.lt.u32.totalorder %s618_s17, %s813_s12 }
  0x19   : > { %p622_p7 = pneg %p621_p4  ;;  %p626_p10 = por %p625_p8, %p624_p5 }
  0x1b   : > { %p628_p0 = por %p627_p9, %p626_p10 }
  0x1d   : > { %p629_p1 = pnand %p628_p0, %p622_p7 }
  0x1f   : > { %632 = shalt.err (!%p629_p1)
}
  0x20   : > { %s633_s7 = scalar_lea.vmem %s821_s14, 2048  ;;  %s716_s9 = smov [#allocation2]  }
  0x21   : > { %p634_p2 = scmp.ne.s32.totalorder %s821_s14, %s633_s7  ;;  %s638_s10 = sshll.u32 %s716_s9, 4  ;;  %s639_s10 = int_to_ptr.vmem [resolvable:$false] %s638_s10 }
  0x22   : > { %s640_s11 = scalar_lea.vmem %s639_s10, 4096  ;;  %p641_p11 = scmp.lt.s32.totalorder %s821_s14, %s639_s10 }
  0x23   : > { %p636_p4 = pnand %p634_p2, %p620_p3  ;;  %p642_p5 = scmp.lt.s32.totalorder %s640_s11, %s633_s7 }
  0x25   : > { %p637_p12 = pneg %p636_p4  ;;  %p643_p8 = por %p642_p5, %p641_p11 }
  0x27   : > { %p644_p9 = pnand %p643_p8, %p637_p12 }
  0x29   : > { %647 = shalt.err (!%p644_p9)
}
  0x2a   : > { %555 = dma.hbm_to_vmem [thread:$0]  (!%p817_p13), %s813_s12, 2048, %s821_s14, %s188_s16  }
  0x2b   : > { %p1106_p0 = scmp.lt.s32.totalorder %s714_s21, 3  ;;  %p1107_p1 = scmp.ge.s32.totalorder %s714_s21, 1 }
  0x2d   : > { %p205_p3 = pnand %p1107_p1, %p1106_p0 }
  0x2e   : > { %s855_s13 = sand.u32 (!%p205_p3), 1, %s706_s19  }
  0x2f   : > { %208 = sbr.rel (%p205_p3) target bundleno = 613 (0x265), region = 40  ;;  %s538_s17 = sshll.u32 (!%p205_p3), %s855_s13, 7 }
  0x30   : > { %s211_s23 = scalar_lea.sflag (!%p205_p3), [#allocation3], %s855_s13  ;;  %s861_s15 = scalar_lea.vmem (!%p205_p3), [#allocation2], %s538_s17 }
  0x36   : > { %693 = dma.done.wait (%p793_p6), %s211_s23, 2048  }
  0x37   : > { %695 = vsyncadd (%p793_p6), %s211_s23, 4294965248  ;;  %vm305_vm0 = vcmask 1043456   ;;  %v868_v0 = vld [vmem:[%s861_s15] sm:$0xff]  ;;  %v871_v1 = vld [vmem:[%s861_s15 + $0x8] sm:$0xff]  ;;  %vm374_vm1 = vcmask 11264   ;;  %s547_s7 = sshll.u32 %s771_s22, 11 }
  0x38   : > { %v273_v2 = vcombine.high %v868_v0, %v868_v0  ;;  %v274_v3 = vcombine.high %v871_v1, %v871_v1  ;;  %v306_v4 = vsel %vm305_vm0, %v868_v0, 0.0  ;;  %v880_v5 = vld [vmem:[%s861_s15 + $0x10] sm:$0xff]  ;;  %v309_v7 = vsel %vm305_vm0, %v871_v1, 0.0  ;;  %v889_v11 = vld [vmem:[%s861_s15 + $0x18] sm:$0xff]  ;;  %v897_v17 = vld [vmem:[%s861_s15 + $0x20] sm:$0xff]  ;;  %s1016_s9 = scalar_lea.vmem [#allocation5], %s538_s17  ;;  %s1042_s17 = scalar_lea.hbm %s1099_s5, %s547_s7 }
  0x39   : > { %v275_v9 = vcombine.high %v880_v5, %v880_v5  ;;  %v313_v13 = vsel %vm305_vm0, %v880_v5, 0.0  ;;  %v276_v15 = vcombine.high %v889_v11, %v889_v11  ;;  %v317_v19 = vsel %vm305_vm0, %v889_v11, 0.0  ;;  %v905_v23 = vld [vmem:[%s861_s15 + $0x28] sm:$0xff]  ;;  %v913_v29 = vld [vmem:[%s861_s15 + $0x30] sm:$0xff]  ;;  %v921_v35 = vld [vmem:[%s861_s15 + $0x38] sm:$0xff]  ;;  %s461_s10 = sshll.u32 %s1016_s9, 4  ;;  %s1044_s10 = int_to_ptr.vmem [resolvable:$true] %s461_s10 }
  0x3a   : > { %v307_v6 = vsel %vm305_vm0, %v273_v2, 0.0  ;;  %v311_v10 = vsel %vm305_vm0, %v274_v3, 0.0  ;;  %v277_v21 = vcombine.high %v897_v17, %v897_v17  ;;  %v321_v25 = vsel %vm305_vm0, %v897_v17, 0.0  ;;  %v929_v41 = vld [vmem:[%s861_s15 + $0x40] sm:$0xff]  ;;  %v937_v47 = vld [vmem:[%s861_s15 + $0x48] sm:$0xff]  ;;  %v945_v53 = vld [vmem:[%s861_s15 + $0x50] sm:$0xff] }
  0x3b   : > { %v308_v8 = vadd.f32 %v307_v6, %v306_v4  ;;  %v315_v16 = vsel %vm305_vm0, %v275_v9, 0.0  ;;  %v319_v22 = vsel %vm305_vm0, %v276_v15, 0.0  ;;  %v278_v27 = vcombine.high %v905_v23, %v905_v23  ;;  %v953_v59 = vld [vmem:[%s861_s15 + $0x58] sm:$0xff]  ;;  %v961_v3 = vld [vmem:[%s861_s15 + $0x60] sm:$0xff]  ;;  %s447_s23 = scalar_lea.sflag [#allocation4], %s855_s13  ;;  %p1108_p11 = scmp.ne.s32.totalorder %s1103_s30, 0 }
  0x3c   : > { %v323_v28 = vsel %vm305_vm0, %v277_v21, 0.0  ;;  %v325_v31 = vsel %vm305_vm0, %v905_v23, 0.0  ;;  %v279_v33 = vcombine.high %v913_v29, %v913_v29  ;;  %v329_v37 = vsel %vm305_vm0, %v913_v29, 0.0  ;;  %s719_s29 = smov [#allocation5]  }
  0x3d   : > { %v310_v12 = vadd.f32 %v309_v7, %v308_v8  ;;  %v327_v34 = vsel %vm305_vm0, %v278_v27, 0.0  ;;  %v280_v39 = vcombine.high %v921_v35, %v921_v35  ;;  %v333_v43 = vsel %vm305_vm0, %v921_v35, 0.0  ;;  %s652_s12 = sshll.u32 %s719_s29, 4  ;;  %s653_s12 = int_to_ptr.vmem [resolvable:$false] %s652_s12 }
  0x3e   : > { %v331_v40 = vsel %vm305_vm0, %v279_v33, 0.0  ;;  %v281_v45 = vcombine.high %v929_v41, %v929_v41  ;;  %v337_v49 = vsel %vm305_vm0, %v929_v41, 0.0  ;;  %v282_v51 = vcombine.high %v937_v47, %v937_v47  ;;  %s654_s14 = scalar_lea.vmem %s653_s12, 4096  ;;  %p655_p7 = scmp.lt.s32.totalorder %s1044_s10, %s653_s12 }
  0x3f   : > { %v312_v14 = vadd.f32 %v311_v10, %v310_v12  ;;  %v335_v46 = vsel %vm305_vm0, %v280_v39, 0.0  ;;  %v341_v55 = vsel %vm305_vm0, %v937_v47, 0.0  ;;  %v283_v57 = vcombine.high %v945_v53, %v945_v53  ;;  %v969_v10 = vld [vmem:[%s861_s15 + $0x68] sm:$0xff]  ;;  %v372_v39 = vld [vmem:[%s1095_s1] sm:$0xf] }
  0x40   : > { %v339_v52 = vsel %vm305_vm0, %v281_v45, 0.0  ;;  %v343_v58 = vsel %vm305_vm0, %v282_v51, 0.0  ;;  %v345_v61 = vsel %vm305_vm0, %v945_v53, 0.0  ;;  %v284_v63 = vcombine.high %v953_v59, %v953_v59 }
  0x41   : > { %v314_v18 = vadd.f32 %v313_v13, %v312_v14  ;;  %v347_v2 = vsel %vm305_vm0, %v283_v57, 0.0  ;;  %v349_v6 = vsel %vm305_vm0, %v953_v59, 0.0  ;;  %v285_v8 = vcombine.high %v961_v3, %v961_v3 }
  0x42   : > { %v351_v9 = vsel %vm305_vm0, %v284_v63, 0.0  ;;  %v353_v13 = vsel %vm305_vm0, %v961_v3, 0.0  ;;  %v286_v15 = vcombine.high %v969_v10, %v969_v10 }
  0x43   : > { %v316_v20 = vadd.f32 %v315_v16, %v314_v18  ;;  %v355_v16 = vsel %vm305_vm0, %v285_v8, 0.0  ;;  %v977_v18 = vld [vmem:[%s861_s15 + $0x70] sm:$0xff] }
  0x44   : > { %v361_v27 = vsel %vm305_vm0, %v977_v18, 0.0 }
  0x45   : > { %v318_v24 = vadd.f32 %v317_v19, %v316_v20  ;;  %v357_v20 = vsel %vm305_vm0, %v969_v10, 0.0 }
  0x47   : > { %v320_v26 = vadd.f32 %v319_v22, %v318_v24  ;;  %v287_v22 = vcombine.high %v977_v18, %v977_v18  ;;  %v359_v24 = vsel %vm305_vm0, %v286_v15, 0.0 }
  0x49   : > { %v322_v30 = vadd.f32 %v321_v25, %v320_v26  ;;  %v985_v25 = vld [vmem:[%s861_s15 + $0x78] sm:$0xff]  ;;  %s648_s15 = scalar_lea.vmem %s1044_s10, 2048 }
  0x4a   : > { %v365_v33 = vsel %vm305_vm0, %v985_v25, 0.0  ;;  %p649_p6 = scmp.ne.s32.totalorder %s1044_s10, %s648_s15  ;;  %p656_p10 = scmp.lt.s32.totalorder %s654_s14, %s648_s15 }
  0x4b   : > { %v324_v32 = vadd.f32 %v323_v28, %v322_v30  ;;  %v288_v30 = vcombine.high %v985_v25, %v985_v25 }
  0x4c   : > { %p650_p12 = pnand %p649_p6, %p1108_p11  ;;  %p657_p2 = por %p656_p10, %p655_p7 }
  0x4d   : > { %v326_v36 = vadd.f32 %v325_v31, %v324_v32  ;;  %v363_v31 = vsel %vm305_vm0, %v287_v22, 0.0 }
  0x4e   : > { %p651_p13 = pneg %p650_p12 }
  0x4f   : > { %v328_v38 = vadd.f32 %v327_v34, %v326_v36  ;;  %v367_v36 = vsel %vm305_vm0, %v288_v30, 0.0 }
  0x50   : > { %p658_p4 = pnand %p657_p2, %p651_p13 }
  0x51   : > { %v330_v42 = vadd.f32 %v329_v37, %v328_v38 }
  0x53   : > { %v332_v44 = vadd.f32 %v331_v40, %v330_v42 }
  0x55   : > { %v334_v48 = vadd.f32 %v333_v43, %v332_v44 }
  0x57   : > { %v336_v50 = vadd.f32 %v335_v46, %v334_v48 }
  0x59   : > { %v338_v54 = vadd.f32 %v337_v49, %v336_v50  ;;  %v386_v49 = vlaneseq }
  0x5b   : > { %v340_v56 = vadd.f32 %v339_v52, %v338_v54  ;;  %v387_v52 = vshrl.u32 %v386_v49, 7  ;;  %v382_v54 = vld [vmem:[%s1096_s2] sm:$0x1] }
  0x5d   : > { %v342_v60 = vadd.f32 %v341_v55, %v340_v56  ;;  %v388_v57 = vsub.s32 0, %v387_v52 }
  0x5f   : > { %v344_v62 = vadd.f32 %v343_v58, %v342_v60  ;;  %v385_v60 = vld [vmem:[%s1097_s3] sm:$0xf] }
  0x61   : > { %v346_v4 = vadd.f32 %v345_v61, %v344_v62 }
  0x63   : > { %v348_v7 = vadd.f32 %v347_v2, %v346_v4  ;;  %v717_v2 = vmov 0   ;;  %v394_v4 = vld [vmem:[%s1098_s4] sm:$0xf] }
  0x64   : > { %596 = vset.pattern.permute.xlu1 %v717_v2  ;;  %597 = vset.pattern.permute.xlu0 %v717_v2 }
  0x65   : > { %v350_v12 = vadd.f32 %v349_v6, %v348_v7 }
  0x67   : > { %v352_v14 = vadd.f32 %v351_v9, %v350_v12 }
  0x69   : > { %v354_v19 = vadd.f32 %v353_v13, %v352_v14  ;;  %v718_v14 = vmov 839922192  }
  0x6a   : > { %v407_v15 = vunpack.c.l.s4 %v718_v14 }
  0x6b   : > { %v356_v21 = vadd.f32 %v355_v16, %v354_v19 }
  0x6c   : > { %v408_v16 = vunpack.c.0.s8 %v407_v15 }
  0x6d   : > { %v358_v26 = vadd.f32 %v357_v20, %v356_v21 }
  0x6e   : > { %v411_v19 = vsub.s32 %v408_v16, %v387_v52 }
  0x6f   : > { %v360_v28 = vadd.f32 %v359_v24, %v358_v26 }
  0x71   : > { %v362_v32 = vadd.f32 %v361_v27, %v360_v28 }
  0x73   : > { %v364_v34 = vadd.f32 %v363_v31, %v362_v32 }
  0x75   : > { %v366_v37 = vadd.f32 %v365_v33, %v364_v34 }
  0x77   : > { %v368_v38 = vadd.f32 %v367_v36, %v366_v37 }
  0x79   : > { %369 = vadd.xlane.f32.xlu0 %v368_v38 }
 0x106   : > { %v370_v40 = vpop.xlane.xlu0 %369 }
 0x107   : > { %v371_v42 = vmul.f32 0.00024414063, %v370_v40 }
 0x109   : > { %v373_v43 = vmul.f32 %v372_v39, %v371_v42 }
 0x10b   : > { %v375_v44 = vsel %vm374_vm1, %v373_v43, 0.0 }
 0x10c   : > { %v376_v45 = vrot.slane %v375_v44, 4 }
 0x10e   : > { %v377_v46 = vadd.f32 %v376_v45, %v375_v44 }
 0x110   : > { %v378_v48 = vrot.slane %v377_v46, 2 }
 0x112   : > { %v379_v50 = vadd.f32 %v378_v48, %v377_v46 }
 0x114   : > { %v380_v51 = vrot.slane %v379_v50, 1 }
 0x116   : > { %v381_v55 = vadd.f32 %v380_v51, %v379_v50 }
 0x118   : > { %v383_v56 = vadd.f32 %v382_v54, %v381_v55 }
 0x11a   : > { %v384_v58 = vmax.f32 %v383_v56, 0.0 }
 0x11c   : > { %v389_v61 = vrot.slane %v384_v58, %v388_v57 }
 0x11e   : > { %v390_v62 = vmul.f32 %v389_v61, %v385_v60 }
 0x120   : > { %v391_v63 = vsel %vm374_vm1, %v390_v62, 0.0 }
 0x121   : > { %392 = vadd.xlane.f32.xlu0 %v391_v63 }
 0x1ae   : > { %v393_v6 = vpop.xlane.xlu0 %392 }
 0x1af   : > { %v395_v7 = vadd.f32 %v394_v4, %v393_v6 }
 0x1b1   : > { %v540_v8 = vmul.f32 -1.442695, %v395_v7 }
 0x1b3   : > { %614 = vpow2.f32 %v540_v8 }
 0x1bd   : > { %v615_v9 = vpop.eup %614 }
 0x1be   : > { %v399_v12 = vadd.f32 1.0, %v615_v9 }
 0x1c0   : > { %616 = vrcp.f32 %v399_v12 }
 0x1ca   : > { %v617_v13 = vpop.eup %616 }
 0x1cb   : > { %404 = vperm.xlu1 %596, %v617_v13  }
 0x24a   : > { %v405_v20 = vpop.permute.xlu1 %404 }
 0x24b   : > { %v412_v21 = vrot.slane %v405_v20, %v411_v19 }
 0x24d   : > { %v414_v22 = vmul.f32 %v412_v21, %v868_v0  ;;  %v415_v24 = vmul.f32 %v412_v21, %v871_v1  ;;  %v416_v26 = vmul.f32 %v412_v21, %v880_v5  ;;  %v417_v27 = vmul.f32 %v412_v21, %v889_v11 }
 0x24e   : > { %v418_v28 = vmul.f32 %v412_v21, %v897_v17  ;;  %v419_v0 = vmul.f32 %v412_v21, %v905_v23  ;;  %v420_v1 = vmul.f32 %v412_v21, %v913_v29  ;;  %v421_v5 = vmul.f32 %v412_v21, %v921_v35 }
 0x24f   : > { %v422_v11 = vmul.f32 %v412_v21, %v929_v41  ;;  %v423_v30 = vmul.f32 %v412_v21, %v937_v47  ;;  %v424_v31 = vmul.f32 %v412_v21, %v945_v53  ;;  %v425_v32 = vmul.f32 %v412_v21, %v953_v59  ;;  %430 = vst [vmem:[%s1016_s9] sm:$0xff] %v414_v22 }
 0x250   : > { %431 = vst [vmem:[%s1016_s9 + $0x8] sm:$0xff] %v415_v24  ;;  %432 = vst [vmem:[%s1016_s9 + $0x10] sm:$0xff] %v416_v26  ;;  %v426_v17 = vmul.f32 %v412_v21, %v961_v3  ;;  %v427_v23 = vmul.f32 %v412_v21, %v969_v10  ;;  %v428_v29 = vmul.f32 %v412_v21, %v977_v18 }
 0x251   : > { %433 = vst [vmem:[%s1016_s9 + $0x18] sm:$0xff] %v417_v27  ;;  %v429_v35 = vmul.f32 %v412_v21, %v985_v25  ;;  %434 = vst [vmem:[%s1016_s9 + $0x20] sm:$0xff] %v418_v28 }
 0x252   : > { %435 = vst [vmem:[%s1016_s9 + $0x28] sm:$0xff] %v419_v0  ;;  %436 = vst [vmem:[%s1016_s9 + $0x30] sm:$0xff] %v420_v1 }
 0x253   : > { %437 = vst [vmem:[%s1016_s9 + $0x38] sm:$0xff] %v421_v5  ;;  %438 = vst [vmem:[%s1016_s9 + $0x40] sm:$0xff] %v422_v11 }
 0x254   : > { %439 = vst [vmem:[%s1016_s9 + $0x48] sm:$0xff] %v423_v30  ;;  %440 = vst [vmem:[%s1016_s9 + $0x50] sm:$0xff] %v424_v31 }
 0x255   : > { %441 = vst [vmem:[%s1016_s9 + $0x58] sm:$0xff] %v425_v32  ;;  %442 = vst [vmem:[%s1016_s9 + $0x60] sm:$0xff] %v426_v17 }
 0x256   : > { %443 = vst [vmem:[%s1016_s9 + $0x68] sm:$0xff] %v427_v23  ;;  %444 = vst [vmem:[%s1016_s9 + $0x70] sm:$0xff] %v428_v29 }
 0x257   : > { %445 = vst [vmem:[%s1016_s9 + $0x78] sm:$0xff] %v429_v35 }
 0x258   : > { %661 = shalt.err (!%p658_p4)
}
 0x259   : > { %s662_s13 = scalar_lea.hbm %s1042_s17, 2048  ;;  %s666_s26 = scalar_lea.hbm %s1099_s5, 4096 }
 0x25a   : > { %p663_p5 = scmp.ne.s32.totalorder %s1042_s17, %s662_s13  ;;  %p667_p0 = scmp.lt.u32.totalorder %s1042_s17, %s1099_s5 }
 0x25b   : > { %p668_p1 = scmp.lt.u32.totalorder %s666_s26, %s662_s13  ;;  %p670_p6 = scmp.lt.u32.totalorder %s662_s13, %s1042_s17 }
 0x25c   : > { %p664_p8 = pnand %p663_p5, %p1108_p11 }
 0x25d   : > { %p669_p3 = por %p668_p1, %p667_p0 }
 0x25e   : > { %p665_p9 = pneg %p664_p8 }
 0x25f   : > { %p671_p12 = por %p670_p6, %p669_p3 }
 0x261   : > { %p672_p13 = pnand %p671_p12, %p665_p9 }
 0x263   : > { %675 = shalt.err (!%p672_p13)
}
 0x264   : > { %550 = dma.vmem_to_hbm [thread:$0]  (%p1108_p11), %s1044_s10, 2048, %s1042_s17, %s447_s23  }
 0x265 PF: > { %s473_s7 = sand.u32 1, %s702_s18   ;;  %p1109_p7 = scmp.ne.s32.totalorder %s1104_s6, 0 }
 0x266   : > { %p1110_p10 = scmp.ge.s32.totalorder %s714_s21, 2  ;;  %s474_s9 = scalar_lea.sflag [#allocation4], %s473_s7 }
 0x268   : > { %p557_p2 = pnand %p1110_p10, %p1109_p7 }
 0x26a   : > { %697 = dma.done.wait (!%p557_p2), %s474_s9, 2048  }
 0x26b   : > { %699 = vsyncadd (!%p557_p2), %s474_s9, 4294965248  ;;  %p18_p4 = scmp.ge.s32.totalorder %s775_s24, 4   ;;  %s1111_s18 = smov %s706_s19 }
 0x26c   : > { %s1112_s19 = smov %s710_s20  ;;  %s1113_s20 = smov %s787_s27 }
 0x26d   : > { %s1114_s21 = smov %s775_s24  ;;  %20 = sbr.rel (!%p18_p4) target bundleno = 5 (0x5), region = 85 }
 0x274   :  { %479 = vsyncpa [#allocation3], 1 }
 0x275   :  { %481 = vsyncpa [#allocation3 + $0x1], 1 }
 0x276   :  { %482 = vsyncpa [#allocation4], 1 }
 0x277   :  { %484 = vsyncpa [#allocation4 + $0x1], 1 }

</bundles_post_ra>
